<compile_context>
chip_gen: v6e
topology: v6e:2x2x1
jax: 0.10.0
libtpu: 0.0.40
codegen_flags: <defaults>
</compile_context>

<pallas_src>
import functools
import math

import jax
import jax.numpy as jnp
from jax import lax
from jax.experimental import pallas as pl
from jax.experimental.pallas import tpu as pltpu


# x @ W.T with W in (out_features, in_features) layout: contract x's last dim
# with W's last (in) dim -- no transpose is materialized.
_DN_X_WT = (((1,), (1,)), ((), ()))
# probs @ v: contract probs' last dim with v's first dim.
_DN_P_V = (((1,), (0,)), ((), ()))


def _attention_kernel(q_ref, k_ref, v_ref, mask_ref, w_ref, b_ref,
                      *out_refs, return_weights):
    f32 = jnp.float32
    bf16 = jnp.bfloat16

    # Current (batch, query-tile) blocks; leading block dim is 1 -> index away.
    q = q_ref[0].astype(bf16)      # (Tq, D)
    k = k_ref[0].astype(bf16)      # (S,  D)
    v = v_ref[0].astype(bf16)      # (S,  D)
    mask = mask_ref[0]             # (1,  S) f32

    # Linear projections (bf16 MXU inputs, f32 accumulation, f32 bias add).
    # NOTE: kp/vp are recomputed per query tile; for the nominal shapes
    # (S <= 256) there is exactly one query tile so nothing is recomputed.
    qp = lax.dot_general(q, w_ref[0], _DN_X_WT,
                         preferred_element_type=f32) + b_ref[0]   # (Tq, D)
    kp = lax.dot_general(k, w_ref[1], _DN_X_WT,
                         preferred_element_type=f32) + b_ref[1]   # (S, D)
    vp = lax.dot_general(v, w_ref[2], _DN_X_WT,
                         preferred_element_type=f32) + b_ref[2]   # (S, D)

    # Scaled scores: qp @ kp.T without an explicit transpose.
    d_k = q_ref.shape[-1]
    scale = 1.0 / math.sqrt(d_k)
    scores = lax.dot_general(qp.astype(bf16), kp.astype(bf16), _DN_X_WT,
                             preferred_element_type=f32) * scale  # (Tq, S)

    # masked_fill(mask == 0, -1e9); mask broadcasts over the query axis.
    scores = jnp.where(mask == 0.0, jnp.float32(-1.0e9), scores)

    # Numerically stable softmax over the key axis, fully in f32.
    m = jnp.max(scores, axis=-1, keepdims=True)
    e = jnp.exp(scores - m)
    denom = jnp.sum(e, axis=-1, keepdims=True)
    probs = e * pl.reciprocal(denom, approx=True)                 # (Tq, S) f32

    # Attention output + final linear projection.
    ctx = lax.dot_general(probs.astype(bf16), vp.astype(bf16), _DN_P_V,
                          preferred_element_type=f32)             # (Tq, D)
    out = lax.dot_general(ctx.astype(bf16), w_ref[3], _DN_X_WT,
                          preferred_element_type=f32) + b_ref[3]  # (Tq, D)

    out_refs[0][0] = out.astype(out_refs[0].dtype)
    if return_weights:
        out_refs[1][0] = probs.astype(out_refs[1].dtype)


def _pick_query_tile(S):
    """Full S when small; otherwise the largest multiple-of-8 divisor <= 256."""
    if S <= 256:
        return S
    for t in (256, 128, 64, 32, 16, 8):
        if S % t == 0:
            return t
    return S  # last resort: untiled (odd sequence length)


def attention_forward(q, k, v, mask, params, *, return_weights=True):
    """Pallas equivalent of Attention.forward. Returns (output, attn_weights).

    If return_weights=False the (B, S, S) attention-weights writeback is
    skipped entirely and None is returned in its place.
    """
    B, S, D = q.shape
    Tq = _pick_query_tile(S)
    if S % Tq != 0:
        Tq = S
    n_qt = S // Tq

    # Weights stay in PyTorch (out, in) layout; stack + cast to bf16 once.
    w_all = jnp.stack(
        [params["wq"], params["wk"], params["wv"], params["wo"]], axis=0
    ).astype(jnp.bfloat16)                                        # (4, D, D)
    b_all = jnp.stack(
        [params["bq"], params["bk"], params["bv"], params["bo"]], axis=0
    ).reshape(4, 1, D).astype(jnp.float32)                        # (4, 1, D)

    # mask.unsqueeze(1): (B, S) -> (B, 1, S)
    mask3 = mask.reshape(B, 1, S).astype(jnp.float32)

    q_spec = pl.BlockSpec((1, Tq, D), lambda b, qi: (b, qi, 0))
    kv_spec = pl.BlockSpec((1, S, D), lambda b, qi: (b, 0, 0))
    mask_spec = pl.BlockSpec((1, 1, S), lambda b, qi: (b, 0, 0))
    w_spec = pl.BlockSpec((4, D, D), lambda b, qi: (0, 0, 0))
    bias_spec = pl.BlockSpec((4, 1, D), lambda b, qi: (0, 0, 0))
    out_spec = pl.BlockSpec((1, Tq, D), lambda b, qi: (b, qi, 0))
    attn_spec = pl.BlockSpec((1, Tq, S), lambda b, qi: (b, qi, 0))

    if return_weights:
        out_shape = (
            jax.ShapeDtypeStruct((B, S, D), jnp.float32),
            jax.ShapeDtypeStruct((B, S, S), jnp.float32),
        )
        out_specs = [out_spec, attn_spec]
    else:
        out_shape = jax.ShapeDtypeStruct((B, S, D), jnp.float32)
        out_specs = out_spec

    # Explicit VMEM budget: per-step blocks x2 (double-buffering) + headroom
    # for in-kernel temporaries; clamped so it also fits v7x's 64 MiB VMEM.
    blk_bytes = (
        4 * Tq * D            # q tile (f32)
        + 2 * 4 * S * D       # k, v tiles (f32)
        + 4 * S               # mask
        + 2 * 4 * D * D       # stacked weights (bf16)
        + 4 * 4 * D           # stacked biases (f32)
        + 4 * Tq * D          # output tile
        + (4 * Tq * S if return_weights else 0)
    )
    vmem_limit = min(max(2 * blk_bytes + (8 << 20), 24 << 20), 64 << 20)

    kernel = functools.partial(_attention_kernel, return_weights=return_weights)

    result = pl.pallas_call(
        kernel,
        out_shape=out_shape,
        grid_spec=pltpu.PrefetchScalarGridSpec(
            num_scalar_prefetch=0,
            grid=(B, n_qt),
            in_specs=[q_spec, kv_spec, kv_spec, mask_spec, w_spec, bias_spec],
            out_specs=out_specs,
        ),
        compiler_params=pltpu.CompilerParams(
            dimension_semantics=("parallel", "parallel"),
            vmem_limit_bytes=vmem_limit,
        ),
    )(q, k, v, mask3, w_all, b_all)

    if return_weights:
        out, attn = result
        return out, attn
    return result, None


def _reference(q, k, v, mask, params):
    """Pure-JAX (f32) reference replicating the PyTorch forward semantics."""
    D = q.shape[-1]
    qp = q @ params["wq"].T + params["bq"]
    kp = k @ params["wk"].T + params["bk"]
    vp = v @ params["wv"].T + params["bv"]
    weights = jnp.einsum("bqd,bkd->bqk", qp, kp) / math.sqrt(D)
    weights = jnp.where(mask[:, None, :] == 0, -1.0e9, weights)
    probs = jax.nn.softmax(weights, axis=-1)
    out = jnp.einsum("bqk,bkd->bqd", probs, vp) @ params["wo"].T + params["bo"]
    return out, probs


if __name__ == "__main__":
    B, S, D = 2, 8, 32  # small shapes consistent with (batch, seq, d_model)

    key = jax.random.PRNGKey(0)
    keys = jax.random.split(key, 12)

    # Deterministic parameter init (PyTorch Linear shapes: W (D, D), b (D,)).
    bound = 1.0 / math.sqrt(D)
    params = {
        "wq": jax.random.uniform(keys[0], (D, D), jnp.float32, -bound, bound),
        "bq": jax.random.uniform(keys[1], (D,), jnp.float32, -bound, bound),
        "wk": jax.random.uniform(keys[2], (D, D), jnp.float32, -bound, bound),
        "bk": jax.random.uniform(keys[3], (D,), jnp.float32, -bound, bound),
        "wv": jax.random.uniform(keys[4], (D, D), jnp.float32, -bound, bound),
        "bv": jax.random.uniform(keys[5], (D,), jnp.float32, -bound, bound),
        "wo": jax.random.uniform(keys[6], (D, D), jnp.float32, -bound, bound),
        "bo": jax.random.uniform(keys[7], (D,), jnp.float32, -bound, bound),
    }

    q = jax.random.normal(keys[8], (B, S, D), jnp.float32)
    k = jax.random.normal(keys[9], (B, S, D), jnp.float32)
    v = jax.random.normal(keys[10], (B, S, D), jnp.float32)
    # Padding-style mask: last two key positions of batch 1 are masked out.
    mask = jnp.ones((B, S), jnp.float32).at[1, -2:].set(0.0)

    out, attn = attention_forward(q, k, v, mask, params)
    out = jax.block_until_ready(out)
    attn = jax.block_until_ready(attn)

    ref_out, ref_attn = _reference(q, k, v, mask, params)
    # bf16 MXU operands (f32 accumulate) -> tolerances loosened vs pure f32.
    assert jnp.allclose(out, ref_out, atol=5e-2, rtol=5e-2), "output mismatch"
    assert jnp.allclose(attn, ref_attn, atol=2e-2, rtol=2e-2), "attn mismatch"

    # Fast path: skip the (B, S, S) attention-weights writeback entirely.
    out_fast, attn_none = attention_forward(q, k, v, mask, params,
                                            return_weights=False)
    out_fast = jax.block_until_ready(out_fast)
    assert attn_none is None
    assert jnp.allclose(out_fast, out, atol=1e-5, rtol=1e-5), "fast-path mismatch"

    print("KERNEL_OK")
</pallas_src>

<mosaic_0001>
module attributes {stable_mosaic.version = 11 : i64} {
  func.func @_attention_kernel(%arg0: i32, %arg1: i32, %arg2: memref<1x8x32xf32, #tpu.memory_space<vmem>>, %arg3: memref<1x8x32xf32, #tpu.memory_space<vmem>>, %arg4: memref<1x8x32xf32, #tpu.memory_space<vmem>>, %arg5: memref<1x1x8xf32, #tpu.memory_space<vmem>>, %arg6: memref<4x32x32xbf16, #tpu.memory_space<vmem>>, %arg7: memref<4x1x32xf32, #tpu.memory_space<vmem>>, %arg8: memref<1x8x32xf32, #tpu.memory_space<vmem>>, %arg9: memref<1x8x8xf32, #tpu.memory_space<vmem>>) attributes {dimension_semantics = [#tpu.dimension_semantics<parallel>, #tpu.dimension_semantics<parallel>], iteration_bounds = array<i64: 2, 1>, scalar_prefetch = 0 : i64, scratch_operands = 0 : i64, tpu.core_type = #tpu.core_type<tc>, window_params = [{transform_indices = @transform_0, window_bounds = array<i64: 1, 8, 32>}, {transform_indices = @transform_1, window_bounds = array<i64: 1, 8, 32>}, {transform_indices = @transform_2, window_bounds = array<i64: 1, 8, 32>}, {transform_indices = @transform_3, window_bounds = array<i64: 1, 1, 8>}, {pipeline_mode = #tpu.pipeline_mode<synchronous>, transform_indices = @transform_4, window_bounds = array<i64: 4, 32, 32>}, {pipeline_mode = #tpu.pipeline_mode<synchronous>, transform_indices = @transform_5, window_bounds = array<i64: 4, 1, 32>}, {transform_indices = @transform_6, window_bounds = array<i64: 1, 8, 32>}, {transform_indices = @transform_7, window_bounds = array<i64: 1, 8, 8>}]} {
    %c0 = arith.constant 0 : index
    %c0_0 = arith.constant 0 : index
    %c0_1 = arith.constant 0 : index
    %0 = vector.load %arg2[%c0, %c0_0, %c0_1] : memref<1x8x32xf32, #tpu.memory_space<vmem>>, vector<1x8x32xf32>
    %1 = vector.shape_cast %0 : vector<1x8x32xf32> to vector<8x32xf32>
    %2 = arith.truncf %1 : vector<8x32xf32> to vector<8x32xbf16>
    %c0_2 = arith.constant 0 : index
    %c0_3 = arith.constant 0 : index
    %c0_4 = arith.constant 0 : index
    %3 = vector.load %arg3[%c0_2, %c0_3, %c0_4] : memref<1x8x32xf32, #tpu.memory_space<vmem>>, vector<1x8x32xf32>
    %4 = vector.shape_cast %3 : vector<1x8x32xf32> to vector<8x32xf32>
    %5 = arith.truncf %4 : vector<8x32xf32> to vector<8x32xbf16>
    %c0_5 = arith.constant 0 : index
    %c0_6 = arith.constant 0 : index
    %c0_7 = arith.constant 0 : index
    %6 = vector.load %arg4[%c0_5, %c0_6, %c0_7] : memref<1x8x32xf32, #tpu.memory_space<vmem>>, vector<1x8x32xf32>
    %7 = vector.shape_cast %6 : vector<1x8x32xf32> to vector<8x32xf32>
    %8 = arith.truncf %7 : vector<8x32xf32> to vector<8x32xbf16>
    %c0_8 = arith.constant 0 : index
    %c0_9 = arith.constant 0 : index
    %c0_10 = arith.constant 0 : index
    %9 = vector.load %arg5[%c0_8, %c0_9, %c0_10] : memref<1x1x8xf32, #tpu.memory_space<vmem>>, vector<1x1x8xf32>
    %10 = vector.shape_cast %9 : vector<1x1x8xf32> to vector<1x8xf32>
    %c0_11 = arith.constant 0 : index
    %c0_12 = arith.constant 0 : index
    %c0_13 = arith.constant 0 : index
    %11 = vector.load %arg6[%c0_11, %c0_12, %c0_13] : memref<4x32x32xbf16, #tpu.memory_space<vmem>>, vector<1x32x32xbf16>
    %12 = vector.shape_cast %11 : vector<1x32x32xbf16> to vector<32x32xbf16>
    %cst = arith.constant dense<0.000000e+00> : vector<8x32xf32>
    %13 = tpu.matmul %2, %12, %cst {dimension_numbers = #tpu.dot_dimension_numbers<[1], [1], [0], [0], [0, 0, 1, 0], [], []>} : vector<8x32xbf16>, vector<32x32xbf16>, vector<8x32xf32> -> vector<8x32xf32>
    %c0_14 = arith.constant 0 : index
    %c0_15 = arith.constant 0 : index
    %c0_16 = arith.constant 0 : index
    %14 = vector.load %arg7[%c0_14, %c0_15, %c0_16] : memref<4x1x32xf32, #tpu.memory_space<vmem>>, vector<1x1x32xf32>
    %15 = vector.shape_cast %14 : vector<1x1x32xf32> to vector<1x32xf32>
    %16 = vector.broadcast %15 : vector<1x32xf32> to vector<8x32xf32>
    %17 = arith.addf %13, %16 : vector<8x32xf32>
    %c1 = arith.constant 1 : index
    %c0_17 = arith.constant 0 : index
    %c0_18 = arith.constant 0 : index
    %18 = vector.load %arg6[%c1, %c0_17, %c0_18] : memref<4x32x32xbf16, #tpu.memory_space<vmem>>, vector<1x32x32xbf16>
    %19 = vector.shape_cast %18 : vector<1x32x32xbf16> to vector<32x32xbf16>
    %cst_19 = arith.constant dense<0.000000e+00> : vector<8x32xf32>
    %20 = tpu.matmul %5, %19, %cst_19 {dimension_numbers = #tpu.dot_dimension_numbers<[1], [1], [0], [0], [0, 0, 1, 0], [], []>} : vector<8x32xbf16>, vector<32x32xbf16>, vector<8x32xf32> -> vector<8x32xf32>
    %c1_20 = arith.constant 1 : index
    %c0_21 = arith.constant 0 : index
    %c0_22 = arith.constant 0 : index
    %21 = vector.load %arg7[%c1_20, %c0_21, %c0_22] : memref<4x1x32xf32, #tpu.memory_space<vmem>>, vector<1x1x32xf32>
    %22 = vector.shape_cast %21 : vector<1x1x32xf32> to vector<1x32xf32>
    %23 = vector.broadcast %22 : vector<1x32xf32> to vector<8x32xf32>
    %24 = arith.addf %20, %23 : vector<8x32xf32>
    %c2 = arith.constant 2 : index
    %c0_23 = arith.constant 0 : index
    %c0_24 = arith.constant 0 : index
    %25 = vector.load %arg6[%c2, %c0_23, %c0_24] : memref<4x32x32xbf16, #tpu.memory_space<vmem>>, vector<1x32x32xbf16>
    %26 = vector.shape_cast %25 : vector<1x32x32xbf16> to vector<32x32xbf16>
    %cst_25 = arith.constant dense<0.000000e+00> : vector<8x32xf32>
    %27 = tpu.matmul %8, %26, %cst_25 {dimension_numbers = #tpu.dot_dimension_numbers<[1], [1], [0], [0], [0, 0, 1, 0], [], []>} : vector<8x32xbf16>, vector<32x32xbf16>, vector<8x32xf32> -> vector<8x32xf32>
    %c2_26 = arith.constant 2 : index
    %c0_27 = arith.constant 0 : index
    %c0_28 = arith.constant 0 : index
    %28 = vector.load %arg7[%c2_26, %c0_27, %c0_28] : memref<4x1x32xf32, #tpu.memory_space<vmem>>, vector<1x1x32xf32>
    %29 = vector.shape_cast %28 : vector<1x1x32xf32> to vector<1x32xf32>
    %30 = vector.broadcast %29 : vector<1x32xf32> to vector<8x32xf32>
    %31 = arith.addf %27, %30 : vector<8x32xf32>
    %32 = arith.truncf %17 : vector<8x32xf32> to vector<8x32xbf16>
    %33 = arith.truncf %24 : vector<8x32xf32> to vector<8x32xbf16>
    %cst_29 = arith.constant dense<0.000000e+00> : vector<8x8xf32>
    %34 = tpu.matmul %32, %33, %cst_29 {dimension_numbers = #tpu.dot_dimension_numbers<[1], [1], [0], [0], [0, 0, 1, 0], [], []>} : vector<8x32xbf16>, vector<8x32xbf16>, vector<8x8xf32> -> vector<8x8xf32>
    %cst_30 = arith.constant 0.176776692 : f32
    %35 = vector.broadcast %cst_30 : f32 to vector<8x8xf32>
    %36 = arith.mulf %34, %35 : vector<8x8xf32>
    %cst_31 = arith.constant 0.000000e+00 : f32
    %37 = vector.broadcast %cst_31 : f32 to vector<1x8xf32>
    %38 = arith.cmpf oeq, %10, %37 : vector<1x8xf32>
    %cst_32 = arith.constant -1.000000e+09 : f32
    %39 = vector.shape_cast %38 : vector<1x8xi1> to vector<1x8xi1>
    %40 = vector.broadcast %39 : vector<1x8xi1> to vector<8x8xi1>
    %41 = vector.broadcast %cst_32 : f32 to vector<8x8xf32>
    %42 = arith.select %40, %41, %36 : vector<8x8xi1>, vector<8x8xf32>
    %cst_33 = arith.constant dense<0xFF800000> : vector<8xf32>
    %43 = vector.multi_reduction <maximumf>, %42, %cst_33 [1] : vector<8x8xf32> to vector<8xf32>
    %44 = vector.shape_cast %43 : vector<8xf32> to vector<8x1xf32>
    %45 = vector.broadcast %44 : vector<8x1xf32> to vector<8x8xf32>
    %46 = arith.subf %42, %45 : vector<8x8xf32>
    %47 = math.exp %46 : vector<8x8xf32>
    %cst_34 = arith.constant dense<0.000000e+00> : vector<8xf32>
    %48 = vector.multi_reduction <add>, %47, %cst_34 [1] : vector<8x8xf32> to vector<8xf32>
    %49 = vector.shape_cast %48 : vector<8xf32> to vector<8x1xf32>
    %50 = tpu.reciprocal %49 {approx = true} : vector<8x1xf32> -> vector<8x1xf32>
    %51 = vector.broadcast %50 : vector<8x1xf32> to vector<8x8xf32>
    %52 = arith.mulf %47, %51 : vector<8x8xf32>
    %53 = arith.truncf %52 : vector<8x8xf32> to vector<8x8xbf16>
    %54 = arith.truncf %31 : vector<8x32xf32> to vector<8x32xbf16>
    %cst_35 = arith.constant dense<0.000000e+00> : vector<8x32xf32>
    %55 = tpu.matmul %53, %54, %cst_35 {dimension_numbers = #tpu.dot_dimension_numbers<[1], [0], [0], [1], [0, 0, 1, 1], [], []>} : vector<8x8xbf16>, vector<8x32xbf16>, vector<8x32xf32> -> vector<8x32xf32>
    %56 = arith.truncf %55 : vector<8x32xf32> to vector<8x32xbf16>
    %c3 = arith.constant 3 : index
    %c0_36 = arith.constant 0 : index
    %c0_37 = arith.constant 0 : index
    %57 = vector.load %arg6[%c3, %c0_36, %c0_37] : memref<4x32x32xbf16, #tpu.memory_space<vmem>>, vector<1x32x32xbf16>
    %58 = vector.shape_cast %57 : vector<1x32x32xbf16> to vector<32x32xbf16>
    %cst_38 = arith.constant dense<0.000000e+00> : vector<8x32xf32>
    %59 = tpu.matmul %56, %58, %cst_38 {dimension_numbers = #tpu.dot_dimension_numbers<[1], [1], [0], [0], [0, 0, 1, 0], [], []>} : vector<8x32xbf16>, vector<32x32xbf16>, vector<8x32xf32> -> vector<8x32xf32>
    %c3_39 = arith.constant 3 : index
    %c0_40 = arith.constant 0 : index
    %c0_41 = arith.constant 0 : index
    %60 = vector.load %arg7[%c3_39, %c0_40, %c0_41] : memref<4x1x32xf32, #tpu.memory_space<vmem>>, vector<1x1x32xf32>
    %61 = vector.shape_cast %60 : vector<1x1x32xf32> to vector<1x32xf32>
    %62 = vector.broadcast %61 : vector<1x32xf32> to vector<8x32xf32>
    %63 = arith.addf %59, %62 : vector<8x32xf32>
    %c0_42 = arith.constant 0 : index
    %c0_43 = arith.constant 0 : index
    %c0_44 = arith.constant 0 : index
    %64 = vector.load %arg8[%c0_42, %c0_43, %c0_44] : memref<1x8x32xf32, #tpu.memory_space<vmem>>, vector<1x8x32xf32>
    %65 = vector.shape_cast %64 : vector<1x8x32xf32> to vector<8x32xf32>
    %66 = vector.shape_cast %63 : vector<8x32xf32> to vector<1x8x32xf32>
    tpu.vector_store %arg8[%c0_42, %c0_43, %c0_44], %66 {strides = array<i32>} : memref<1x8x32xf32, #tpu.memory_space<vmem>>, vector<1x8x32xf32>,
    %c0_45 = arith.constant 0 : index
    %c0_46 = arith.constant 0 : index
    %c0_47 = arith.constant 0 : index
    %67 = vector.load %arg9[%c0_45, %c0_46, %c0_47] : memref<1x8x8xf32, #tpu.memory_space<vmem>>, vector<1x8x8xf32>
    %68 = vector.shape_cast %67 : vector<1x8x8xf32> to vector<8x8xf32>
    %69 = vector.shape_cast %52 : vector<8x8xf32> to vector<1x8x8xf32>
    tpu.vector_store %arg9[%c0_45, %c0_46, %c0_47], %69 {strides = array<i32>} : memref<1x8x8xf32, #tpu.memory_space<vmem>>, vector<1x8x8xf32>,
    return
  }
  func.func @transform_0(%arg0: i32, %arg1: i32) -> (i32, i32, i32) {
    %c0_i32 = arith.constant 0 : i32
    %c0_i32_0 = arith.constant 0 : i32
    return %arg0, %arg1, %c0_i32 : i32, i32, i32
  }
  func.func @transform_1(%arg0: i32, %arg1: i32) -> (i32, i32, i32) {
    %c0_i32 = arith.constant 0 : i32
    %c0_i32_0 = arith.constant 0 : i32
    %c0_i32_1 = arith.constant 0 : i32
    return %arg0, %c0_i32, %c0_i32_0 : i32, i32, i32
  }
  func.func @transform_2(%arg0: i32, %arg1: i32) -> (i32, i32, i32) {
    %c0_i32 = arith.constant 0 : i32
    %c0_i32_0 = arith.constant 0 : i32
    %c0_i32_1 = arith.constant 0 : i32
    return %arg0, %c0_i32, %c0_i32_0 : i32, i32, i32
  }
  func.func @transform_3(%arg0: i32, %arg1: i32) -> (i32, i32, i32) {
    %c0_i32 = arith.constant 0 : i32
    %c0_i32_0 = arith.constant 0 : i32
    %c0_i32_1 = arith.constant 0 : i32
    return %arg0, %c0_i32, %c0_i32_0 : i32, i32, i32
  }
  func.func @transform_4(%arg0: i32, %arg1: i32) -> (i32, i32, i32) {
    %c0_i32 = arith.constant 0 : i32
    %c0_i32_0 = arith.constant 0 : i32
    %c0_i32_1 = arith.constant 0 : i32
    %c0_i32_2 = arith.constant 0 : i32
    return %c0_i32, %c0_i32_0, %c0_i32_1 : i32, i32, i32
  }
  func.func @transform_5(%arg0: i32, %arg1: i32) -> (i32, i32, i32) {
    %c0_i32 = arith.constant 0 : i32
    %c0_i32_0 = arith.constant 0 : i32
    %c0_i32_1 = arith.constant 0 : i32
    %c0_i32_2 = arith.constant 0 : i32
    return %c0_i32, %c0_i32_0, %c0_i32_1 : i32, i32, i32
  }
  func.func @transform_6(%arg0: i32, %arg1: i32) -> (i32, i32, i32) {
    %c0_i32 = arith.constant 0 : i32
    %c0_i32_0 = arith.constant 0 : i32
    return %arg0, %arg1, %c0_i32 : i32, i32, i32
  }
  func.func @transform_7(%arg0: i32, %arg1: i32) -> (i32, i32, i32) {
    %c0_i32 = arith.constant 0 : i32
    %c0_i32_0 = arith.constant 0 : i32
    return %arg0, %arg1, %c0_i32 : i32, i32, i32
  }
}

</mosaic_0001>

<bundles_post_ra>
// kernel: tpu_custom_call.1
= control target key start
LH: loop header
LB: loop body
LE: loop exit
PB: predicated region body
PF: predicated region fallthrough
CT: control target
= control target key end

     0   :  { %s1856_s0 = inlined_call_operand.hbm [shape: f32[2,8,32], index: 0, kind: input, shape index: {}]   ;;  %s1857_s1 = inlined_call_operand.hbm [shape: f32[2,8,32], index: 1, kind: input, shape index: {}]   ;;  %s1858_s2 = inlined_call_operand.hbm [shape: f32[2,8,32], index: 2, kind: input, shape index: {}]   ;;  %s1859_s3 = inlined_call_operand.vmem [shape: f32[2,1,8], index: 3, kind: input, shape index: {}]   ;;  %s1860_s4 = inlined_call_operand.hbm [shape: bf16[4,32,32], index: 4, kind: input, shape index: {}]   ;;  %s1861_s5 = inlined_call_operand.vmem [shape: f32[4,1,32], index: 5, kind: input, shape index: {}]   ;;  %s1862_s6 = inlined_call_operand.hbm [shape: f32[2,8,32], index: 6, kind: output, shape index: {0}]   ;;  %s1863_s7 = inlined_call_operand.hbm [shape: f32[2,8,8], index: 7, kind: output, shape index: {1}]  }
   0x1   :  { %1873 = sst [smem:[#allocation24_spill]] %s1857_s1 }
   0x2   :  { %13 = vsyncpa [#allocation3], 0 }
   0x3   :  { %15 = vsyncpa [#allocation3 + $0x1], 0 }
   0x4   :  { %16 = vsyncpa [#allocation6], 0 }
   0x5   :  { %18 = vsyncpa [#allocation6 + $0x1], 0 }
   0x6   :  { %19 = vsyncpa [#allocation9], 0 }
   0x7   :  { %20 = vsyncpa [#allocation4], 0 }
   0x8   :  { %22 = vsyncpa [#allocation4 + $0x1], 0 }
   0x9   :  { %23 = vsyncpa [#allocation12], 0 }
   0xa   :  { %25 = vsyncpa [#allocation12 + $0x1], 0  ;;  %s1540_s24 = smov 0   ;;  %s1542_s25 = smov 0  }
   0xb   :  { %s1544_s26 = smov 0   ;;  %s1546_s27 = smov 0  }
   0xc   :  { %s1548_s28 = smov 0   ;;  %s1550_s29 = smov 0  }
   0xd LB: > { %1874 = sst [smem:[#allocation18_spill]] %s1467_s24  ;;  %s43_s30 = sadd.s32 1, %s1483_s28  ;;  %s1487_s29 = sphi %s1550_s29, %s31_s29   ;;  %s1483_s28 = sphi %s1548_s28, %s1899_s28   ;;  %s1479_s27 = sphi %s1546_s27, %s1898_s27   ;;  %s1475_s26 = sphi %s1544_s26, %s1902_s26   ;;  %s1471_s25 = sphi %s1542_s25, %s1901_s25   ;;  %s1467_s24 = sphi %s1540_s24, %s1900_s24  }
   0xe   : > { %1875 = sst [smem:[#allocation19_spill]] %s1483_s28  ;;  %s52_s8 = sadd.s32 1, %s1475_s26 }
   0xf   : > { %1876 = sst [smem:[#allocation20_spill]] %s1487_s29  ;;  %p45_p0 = scmp.ge.s32.totalorder %s43_s30, 2 }
  0x10   : > { %p59_p1 = scmp.ne.s32.totalorder %s1475_s26, %s1471_s25  ;;  %p60_p2 = scmp.eq.s32.totalorder %s1487_s29, 0 }
  0x11   : > { %s1904_s30 = smov (%p45_p0, %s43_s30), 0  ;;  %p1190_p5 = scmp.lt.s32.totalorder %s1487_s29, 2 }
  0x12   : > { %1877 = sst [smem:[#allocation21_spill]] %s1904_s30  ;;  %p61_p4 = por %p60_p2, %p59_p1 }
  0x13   : > { %s47_s9 = ssub.s32 %s1483_s28, %s1904_s30  ;;  %s1864_s10 = sand.u32 1, %s1475_s26  }
  0x14   : > { %p50_p6 = scmp.eq.s32.totalorder %s47_s9, 0  ;;  %s1587_s11 = sshll.u32 %s1864_s10, 3 }
  0x15   : > { %s1590_s12 = sshll.u32 %s1483_s28, 7  ;;  %p1592_p7 = pnand %p1190_p5, %p61_p4 }
  0x16   : > { %s1597_s14 = scalar_select %p50_p6, %s1475_s26, %s52_s8  }
  0x17   : > { %s300_s15 = sand.u32 1, %s1487_s29   ;;  %s1880_s1 = sld [smem:[#allocation24_spill]] }
  0x18   : > { %1879 = sst [smem:[#allocation22_spill]] %s1597_s14  ;;  %s304_s19 = scalar_lea.vmem [#allocation5], %s1587_s11 }
  0x19   : > { %s311_s20 = sshll.u32 %s304_s19, 4  ;;  %s1605_s21 = scalar_lea.sflag [#allocation6], %s300_s15  ;;  %s312_s20 = int_to_ptr.vmem [resolvable:$true] %s311_s20 }
  0x1a   : > { %p1867_p8 = pneg %p1592_p7  ;;  %s1272_s22 = scalar_lea.vmem %s312_s20, 128 }
  0x1b   : > { %p1273_p9 = scmp.ne.s32.totalorder %s312_s20, %s1272_s22  ;;  %s1489_s23 = smov [#allocation5]  }
  0x1c   : > { %s1277_s8 = sshll.u32 %s1489_s23, 4  ;;  %s1278_s8 = int_to_ptr.vmem [resolvable:$false] %s1277_s8 }
  0x1d   : > { %s309_s18 = scalar_lea.hbm %s1880_s1, %s1590_s12  ;;  %p1275_p10 = pnand %p1273_p9, %p1867_p8 }
  0x1e   : > { %s1279_s9 = scalar_lea.vmem %s1278_s8, 256  ;;  %p1280_p12 = scmp.lt.s32.totalorder %s312_s20, %s1278_s8 }
  0x1f   : > { %p1276_p11 = pneg %p1275_p10  ;;  %p1281_p13 = scmp.lt.s32.totalorder %s1279_s9, %s1272_s22 }
  0x21   : > { %p1282_p0 = por %p1281_p13, %p1280_p12 }
  0x23   : > { %p1283_p2 = pnand %p1282_p0, %p1276_p11 }
  0x25   : > { %1286 = shalt.err (!%p1283_p2)
}
  0x26   : > { %1178 = dma.hbm_to_vmem [thread:$0]  (!%p1592_p7), %s309_s18, 128, %s312_s20, %s1605_s21  }
  0x27   : > { %s1616_s15 = sadd.s32 4294967295, %s1487_s29   ;;  %s1050_s16 = sadd.s32 4294967294, %s1487_s29  }
  0x28   : > { %p65_p4 = scmp.ne.s32.totalorder %s1471_s25, %s1467_s24  ;;  %p1866_p5 = scmp.eq.s32.totalorder %s1616_s15, 0 }
  0x29   : > { %p211_p6 = scmp.eq.s32.totalorder %s1616_s15, 1  ;;  %p217_p9 = scmp.eq.s32.totalorder %s1050_s16, 1 }
  0x2a   : > { %p1051_p10 = scmp.ge.s32.totalorder %s1487_s29, 1  ;;  %p1626_p11 = por %p1866_p5, %p65_p4 }
  0x2b   : > { %p1633_p12 = por %p211_p6, %p59_p1  ;;  %p1637_p13 = por %p217_p9, %p65_p4 }
  0x2c   : > { %p252_p0 = scmp.lt.s32.totalorder %s1487_s29, 3  ;;  %s1490_s22 = smov [#allocation8]  }
  0x2d   : > { %s1883_s19 = scalar_select %p1637_p13, 1, 0 }
  0x2e   : > { %p1642_p2 = pnand %p1051_p10, %p252_p0  ;;  %s264_s23 = sshll.u32 %s1490_s22, 4  ;;  %s265_s23 = int_to_ptr.vmem [resolvable:$true] %s264_s23 }
  0x2f   : > { %1884 = sst [smem:[#allocation23_spill]] %s1883_s19  ;;  %s285_s1 = scalar_lea.vmem [#allocation2], %s1587_s11 }
  0x30   : > { %p1168_p3 = pneg %p1642_p2  ;;  %s293_s30 = sshll.u32 %s285_s1, 4  ;;  %s1659_s30 = int_to_ptr.vmem [resolvable:$true] %s293_s30 }
  0x31   : > { %s1298_s22 = scalar_lea.vmem %s265_s23, 1024  ;;  %p1306_p0 = scmp.lt.s32.totalorder %s265_s23, %s265_s23 }
  0x32   : > { %p1650_p1 = pnand %p1168_p3, %p1866_p5  ;;  %p1299_p6 = scmp.ne.s32.totalorder %s265_s23, %s1298_s22 }
  0x33   : > { %p1307_p3 = scmp.lt.s32.totalorder %s1298_s22, %s1298_s22 }
  0x34   : > { %p1289_p4 = pneg %p1650_p1 }
  0x35   : > { %p1308_p5 = por %p1307_p3, %p1306_p0 }
  0x36   : > { %p1301_p9 = pnand %p1299_p6, %p1289_p4 }
  0x38   : > { %p1302_p10 = pneg %p1301_p9 }
  0x3a   : > { %p1309_p8 = pnand %p1308_p5, %p1302_p10 }
  0x3c   : > { %1312 = shalt.err (!%p1309_p8)
}
  0x3d   : > { %s1491_s28 = smov 64   ;;  %s1492_s1 = smov 4  }
  0x3e   : > { %1171 = dma.hbm_to_vmem [thread:$0]  (!%p1650_p1), %s1860_s4, 1024, %s265_s23, [#allocation9], %s1491_s28, %s1491_s28, %s1492_s1  }
  0x3f   : > { %s1887_s10 = sand.u32 1, %s1475_s26   ;;  %s1326_s29 = scalar_lea.vmem %s1659_s30, 128 }
  0x40   : > { %s282_s14 = scalar_lea.sflag [#allocation3], %s1887_s10  ;;  %p1327_p4 = scmp.ne.s32.totalorder %s1659_s30, %s1326_s29 }
  0x41   : > { %p1888_p5 = pneg %p1592_p7  ;;  %s1493_s22 = smov [#allocation2]  }
  0x42   : > { %s1331_s19 = sshll.u32 %s1493_s22, 4  ;;  %s1332_s19 = int_to_ptr.vmem [resolvable:$false] %s1331_s19 }
  0x43   : > { %p1329_p8 = pnand %p1327_p4, %p1888_p5  ;;  %s1333_s24 = scalar_lea.vmem %s1332_s19, 256 }
  0x44   : > { %p1334_p9 = scmp.lt.s32.totalorder %s1659_s30, %s1332_s19  ;;  %p1335_p10 = scmp.lt.s32.totalorder %s1333_s24, %s1326_s29 }
  0x45   : > { %p1330_p6 = pneg %p1329_p8 }
  0x46   : > { %p1336_p0 = por %p1335_p10, %p1334_p9 }
  0x48   : > { %p1337_p3 = pnand %p1336_p0, %p1330_p6 }
  0x4a   : > { %1340 = shalt.err (!%p1337_p3)
}
  0x4b   : > { %s1889_s23 = scalar_lea.hbm %s1856_s0, %s1590_s12  ;;  %s327_s19 = scalar_lea.hbm %s1858_s2, %s1590_s12 }
  0x4c   : > { %1175 = dma.hbm_to_vmem [thread:$0]  (!%p1592_p7), %s1889_s23, 128, %s1659_s30, %s282_s14  }
  0x4d   : > { %s322_s24 = scalar_lea.vmem [#allocation7], %s1587_s11  ;;  %p1890_p4 = pmov %p1888_p5 }
  0x4e   : > { %s329_s29 = sshll.u32 %s322_s24, 4  ;;  %s1494_s16 = smov [#allocation7]   ;;  %s330_s29 = int_to_ptr.vmem [resolvable:$true] %s329_s29 }
  0x4f   : > { %s1354_s9 = scalar_lea.vmem %s330_s29, 128  ;;  %s1359_s22 = sshll.u32 %s1494_s16, 4  ;;  %s1360_s22 = int_to_ptr.vmem [resolvable:$false] %s1359_s22 }
  0x50   : > { %p1355_p1 = scmp.ne.s32.totalorder %s330_s29, %s1354_s9  ;;  %s1361_s28 = scalar_lea.vmem %s1360_s22, 256 }
  0x51   : > { %p1362_p6 = scmp.lt.s32.totalorder %s330_s29, %s1360_s22  ;;  %p1363_p9 = scmp.lt.s32.totalorder %s1361_s28, %s1354_s9 }
  0x52   : > { %p1357_p5 = pnand %p1355_p1, %p1890_p4 }
  0x53   : > { %p1364_p10 = por %p1363_p9, %p1362_p6 }
  0x54   : > { %p1358_p8 = pneg %p1357_p5 }
  0x56   : > { %p1365_p0 = pnand %p1364_p10, %p1358_p8 }
  0x58   : > { %1368 = shalt.err (!%p1365_p0)
}
  0x59   : > { %1181 = dma.hbm_to_vmem [thread:$0]  (!%p1592_p7), %s327_s19, 128, %s330_s29, %s1605_s21  }
  0x5a   : > { %344 = sbr.rel (%p1642_p2) target bundleno = 1239 (0x4d7), region = 44  ;;  %s1698_s30 = sand.u32 (!%p1642_p2), 1, %s1471_s25  }
  0x5b   : > { %s1701_s11 = sshll.u32 (!%p1642_p2), %s1698_s30, 3  ;;  %s347_s12 = scalar_lea.sflag (!%p1642_p2), [#allocation3], %s1698_s30 }
  0x5c   : > { %s350_s14 = scalar_lea.vmem (!%p1642_p2), [#allocation2], %s1701_s11 }
  0x5f   : > { %1446 = dma.done.wait (%p1626_p11), %s347_s12, 128  }
  0x60   : > { %1448 = vsyncadd (%p1626_p11), %s347_s12, 4294967168  ;;  %s355_s13 = sand.u32 1, %s1616_s15   ;;  %s359_s20 = scalar_lea.vmem [#allocation5], %s1701_s11 }
  0x61   : > { %s356_s21 = scalar_lea.sflag [#allocation6], %s355_s13 }
  0x62   : > { %1450 = dma.done.wait (%p1626_p11), %s356_s21, 256  }
  0x63   : > { %1452 = vsyncadd (%p1626_p11), %s356_s21, 4294967040  ;;  %s368_s10 = scalar_lea.vmem [#allocation7], %s1701_s11  ;;  %p1891_p7 = scmp.eq.s32.totalorder %s1616_s15, 0 }
  0x65   : > { %1454 = dma.done.wait (%p1891_p7), [#allocation9], 1024   ;;  %p1892_p2 = pmov %p1891_p7 }
  0x66   : > { %v1495_v0 = vmov 0.0   ;;  %vm1496_vm0 = vmmov 0   ;;  %vm453_vm1 = vcmask 261120   ;;  %v1247_v1 = vld [vmem:[#allocation8 + $0x18] sm:$0xff]   ;;  %v1248_v2 = vld [vmem:[#allocation8 + $0x8] sm:$0xff]   ;;  %v1249_v5 = vld [vmem:[#allocation8 + $0x10] sm:$0xff]   ;;  %v698_v34 = vlaneseq }
  0x67   : > { %1456 = vsyncadd (%p1892_p2), [#allocation9], 4294966272  ;;  %1118 = vmatprep.subr.bf16.mxu1 %v1495_v0  ;;  %1110 = vmatprep.subr.bf16.mxu0 %v1495_v0  ;;  %v533_v3 = vsel %vm453_vm1, %v1247_v1, 0  ;;  %v461_v4 = vsel %vm453_vm1, %v1248_v2, 0  ;;  %v1250_v6 = vld [vmem:[#allocation8] sm:$0xff]   ;;  %v530_v7 = vsel %vm453_vm1, %v1249_v5, 0 }
  0x68   : > { %1122 = vmatprep.mubr.msk.bf16.mxu1 %vm1496_vm0, %v1495_v0  ;;  %1114 = vmatprep.mubr.msk.bf16.mxu0 %vm1496_vm0, %v1495_v0  ;;  %v458_v8 = vsel %vm453_vm1, %v1250_v6, 0  ;;  %v427_v9 = vld [vmem:[%s359_s20] sm:$0xff]  ;;  %v425_v10 = vld [vmem:[%s350_s14] sm:$0xff]  ;;  %p421_p11 = scmp.lt.s32.totalorder %s1479_s27, 1  ;;  %v699_v36 = vshrl.u32 %v698_v34, 7  ;;  %v1497_v38 = vmov 0  }
  0x69   : > { %1119 = vmatpush3.bf16.xpose.msra.mxu1 %v533_v3  ;;  %1111 = vmatpush3.bf16.xpose.msra.mxu0 %v461_v4  ;;  %v428_v11 = vpack.c.bf16 %v427_v9, %v427_v9  ;;  %v426_v12 = vpack.c.bf16 %v425_v10, %v425_v10  ;;  %v1072_v13 = vld [vmem:[%s1861_s5 + $0x1] ss:$0 sm:$0xff]  ;;  %v1067_v18 = vld [vmem:[%s1861_s5] ss:$0 sm:$0xff]  ;;  %v1251_v28 = vld [vmem:[#allocation8 + $0x28] sm:$0xff]   ;;  %vm704_vm4 = vcmask 64512  }
  0x6a   : > { %1120 = vmatprep.subr.bf16.mxu1 %v1495_v0  ;;  %1112 = vmatprep.subr.bf16.mxu0 %v1495_v0  ;;  %v605_v29 = vsel %vm453_vm1, %v1251_v28, 0  ;;  %v1252_v30 = vld [vmem:[#allocation8 + $0x20] sm:$0xff]   ;;  %v429_v32 = vld [vmem:[%s368_s10] sm:$0xff]  ;;  %s422_s1 = scalar_select %p421_p11, %s1479_s27, 1  ;;  %v700_v37 = vsub.s32 0, %v699_v36  ;;  %vm721_vm5 = vcmask 1043456  }
  0x6b   : > { %v602_v31 = vsel %vm453_vm1, %v1252_v30, 0  ;;  %v430_v33 = vpack.c.bf16 %v429_v32, %v429_v32  ;;  %v1077_v56 = vld [vmem:[%s1861_s5 + $0x2] ss:$0 sm:$0xff]  ;;  %v1253_v61 = vld [vmem:[#allocation8 + $0x38] sm:$0xff]   ;;  %s420_s22 = scalar_lea.vmem [#allocation11], %s1701_s11  ;;  %s1090_s28 = sshll.u32 %s1479_s27, 7 }
  0x6c   : > { %s423_s29 = scalar_lea.vmem %s1859_s3, %s422_s1  ;;  %v796_v62 = vsel %vm453_vm1, %v1253_v61, 0  ;;  %v1254_v63 = vld [vmem:[#allocation8 + $0x30] sm:$0xff]   ;;  %s872_s13 = scalar_lea.hbm %s1863_s7, %s1090_s28 }
  0x6d   : > { %v431_v35 = vld [vmem:[%s423_s29] sm:$0x1]  ;;  %v793_v1 = vsel %vm453_vm1, %v1254_v63, 0  ;;  %s874_s21 = sshll.u32 %s420_s22, 4  ;;  %s846_s20 = scalar_lea.sflag [#allocation12], %s1698_s30  ;;  %s875_s21 = int_to_ptr.vmem [resolvable:$true] %s874_s21 }
  0x6e   : > { %vm696_vm2 = vcmp.eq.f32.partialorder %v431_v35, 0.0  ;;  %s1369_s10 = scalar_lea.vmem %s875_s21, 128  ;;  %s1498_s15 = smov [#allocation11]  }
  0x6f   : > { %v697_v39 = vsel %vm696_vm2, 1, %v1497_v38  ;;  %p1370_p3 = scmp.ne.s32.totalorder %s875_s21, %s1369_s10  ;;  %s1373_s17 = sshll.u32 %s1498_s15, 4  ;;  %s1374_s17 = int_to_ptr.vmem [resolvable:$false] %s1373_s17 }
  0x70   : > { %v701_v40 = vrot.slane %v697_v39, %v700_v37  ;;  %s1375_s23 = scalar_lea.vmem %s1374_s17, 256  ;;  %p1376_p5 = scmp.lt.s32.totalorder %s875_s21, %s1374_s17 }
  0x71   : > { %1121 = vmatpush3.bf16.xpose.msra.mxu1 %v530_v7  ;;  %1113 = vmatpush3.bf16.xpose.msra.mxu0 %v458_v8  ;;  %p1371_p1 = pnand %p1370_p3, %p1633_p12  ;;  %p1377_p8 = scmp.lt.s32.totalorder %s1375_s23, %s1369_s10 }
  0x72   : > { %1134 = vmatprep.subr.bf16.mxu1 %v1495_v0  ;;  %1126 = vmatprep.subr.bf16.mxu0 %v1495_v0  ;;  %vm702_vm3 = vcmp.eq.s32.totalorder %v701_v40, 1 }
  0x73   : > { %p1372_p4 = pneg %p1371_p1  ;;  %p1378_p6 = por %p1377_p8, %p1376_p5 }
  0x75   : > { %p1379_p9 = pnand %p1378_p6, %p1372_p4 }
  0x78   : > { %1123 = vmatmul.mubr.msk.bf16.vlgmr.msra.gmra.mxu1 %vm453_vm1, %v428_v11  ;;  %1115 = vmatmul.mubr.msk.bf16.vlgmr.msra.gmra.mxu0 %vm453_vm1, %v426_v12 }
  0x79   : > { %1136 = vmatprep.mubr.msk.bf16.mxu1 %vm1496_vm0, %v1495_v0  ;;  %1130 = vmatprep.mubr.msk.bf16.mxu0 %vm1496_vm0, %v1495_v0 }
  0x7a   : > { %1127 = vmatpush3.bf16.xpose.msra.mxu0 %v605_v29 }
  0x7b   : > { %1128 = vmatprep.subr.bf16.mxu0 %v1495_v0 }
  0x82   : > { %1129 = vmatpush3.bf16.xpose.msra.mxu0 %v602_v31 }
  0x83   : > { %1146 = vmatprep.subr.bf16.mxu0 %v1495_v0 }
  0x89   : > { %1131 = vmatmul.mubr.msk.bf16.vlgmr.msra.gmra.mxu0 %vm453_vm1, %v430_v33 }
  0x8a   : > { %1150 = vmatprep.mubr.msk.bf16.mxu0 %vm1496_vm0, %v1495_v0  ;;  %1147 = vmatpush3.bf16.xpose.msra.mxu0 %v796_v62 }
  0x8b   : > { %1148 = vmatprep.subr.bf16.mxu0 %v1495_v0 }
  0x92   : > { %1149 = vmatpush3.bf16.xpose.msra.mxu0 %v793_v1 }
 0x138   : > { %v569_v14 = vpop.f32.mrf.mxu1  ;;  %v497_v16 = vpop.f32.mrf.mxu0 }
 0x139   : > { %v570_v15 = vadd.f32 %v1072_v13, %v569_v14  ;;  %v498_v23 = vadd.f32 %v1067_v18, %v497_v16 }
 0x13a   : > { %v1124_v17 = vpop.f32.mrf.mxu1  ;;  %v1116_v20 = vpop.f32.mrf.mxu0 }
 0x13b   : > { %v648_v19 = vpack.c.bf16 %v570_v15, %v570_v15  ;;  %v647_v27 = vpack.c.bf16 %v498_v23, %v498_v23 }
 0x13c   : > { %v572_v21 = vpop.f32.mrf.mxu1  ;;  %v500_v24 = vpop.f32.mrf.mxu0 }
 0x13d   : > { %v653_v22 = vsel %vm453_vm1, %v648_v19, 0 }
 0x13e   : > { %v1125_v25 = vpop.f32.mrf.mxu1  ;;  %1135 = vmatpush3.bf16.xpose.msra.mxu1 %v653_v22  ;;  %v1117_v26 = vpop.f32.mrf.mxu0 }
 0x13f   : > { %1140 = vmatprep.subr.bf16.mxu1 %v1495_v0 }
 0x145   : > { %1137 = vmatmul.mubr.msk.bf16.vlgmr.msra.gmra.mxu1 %vm453_vm1, %v647_v27 }
 0x146   : > { %1142 = vmatprep.mubr.msk.bf16.mxu1 %vm1496_vm0, %v1495_v0 }
 0x149   : > { %v641_v53 = vpop.f32.mrf.mxu0 }
 0x14a   : > { %v642_v58 = vadd.f32 %v1077_v56, %v641_v53 }
 0x14b   : > { %v1132_v54 = vpop.f32.mrf.mxu0 }
 0x14c   : > { %v717_v59 = vpack.c.bf16 %v642_v58, %v642_v58 }
 0x14d   : > { %v644_v55 = vpop.f32.mrf.mxu0 }
 0x14e   : > { %v723_v60 = vsel %vm721_vm5, %v717_v59, 0 }
 0x14f   : > { %v1133_v57 = vpop.f32.mrf.mxu0  ;;  %1141 = vmatpush3.bf16.msra.mxu1 %v723_v60 }
 0x205   : > { %v689_v41 = vpop.f32.mrf.mxu1 }
 0x206   : > { %v695_v42 = vmul.f32 0.17677669, %v689_v41 }
 0x207   : > { %v1138_v43 = vpop.f32.mrf.mxu1 }
 0x208   : > { %v703_v44 = vsel %vm702_vm3, -1e+09, %v695_v42 }
 0x209   : > { %v692_v45 = vpop.f32.mrf.mxu1  ;;  %v705_v46 = vsel %vm704_vm4, %v703_v44, -inf }
 0x20a   : > { %706 = vmax.xlane.f32.xlu0 %v705_v46 }
 0x20b   : > { %v1139_v47 = vpop.f32.mrf.mxu1 }
 0x293   : > { %v707_v48 = vpop.xlane.xlu0 %706 }
 0x294   : > { %v708_v49 = vsub.f32 %v703_v44, %v707_v48 }
 0x296   : > { %v709_v50 = vmul.f32 1.442695, %v708_v49 }
 0x298   : > { %1255 = vpow2.f32 %v709_v50 }
 0x2a5   : > { %v1256_v51 = vpop.eup %1255 }
 0x2a6   : > { %v711_v52 = vsel %vm704_vm4, %v1256_v51, 0.0 }
 0x2a7   : > { %712 = vadd.xlane.f32.xlu0 %v711_v52 }
 0x330   : > { %v713_v2 = vpop.xlane.xlu0 %712 }
 0x331   : > { %1257 = vrcp.f32 %v713_v2 }
 0x33e   : > { %v1258_v3 = vpop.eup %1257 }
 0x33f   : > { %v715_v4 = vmul.f32 %v1258_v3, %v1256_v51 }
 0x341   : > { %v716_v5 = vpack.c.bf16 %v715_v4, %v715_v4  ;;  %839 = vst.msk [vmem:[%s420_s22] sm:$0xff] %vm704_vm4, %v715_v4 }
 0x343   : > { %1143 = vmatmul.mubr.msk.bf16.vlgmr.msra.gmra.mxu1 %vm704_vm4, %v716_v5 }
 0x403   : > { %v759_v6 = vpop.f32.mrf.mxu1 }
 0x404   : > { %v765_v0 = vpack.c.bf16 %v759_v6, %v759_v6 }
 0x405   : > { %v1144_v7 = vpop.f32.mrf.mxu1 }
 0x406   : > { %1151 = vmatmul.mubr.msk.bf16.vlgmr.msra.gmra.mxu0 %vm453_vm1, %v765_v0 }
 0x407   : > { %v762_v8 = vpop.f32.mrf.mxu1 }
 0x409   : > { %v1145_v9 = vpop.f32.mrf.mxu1 }
 0x40a   : > { %1382 = shalt.err (!%p1379_p9)
}
 0x40b   : > { %s1383_s8 = scalar_lea.hbm %s872_s13, 128  ;;  %s1387_s24 = scalar_lea.hbm %s1863_s7, 256 }
 0x40c   : > { %p1384_p10 = scmp.ne.s32.totalorder %s872_s13, %s1383_s8  ;;  %p1388_p2 = scmp.lt.s32.totalorder %s872_s13, %s1863_s7 }
 0x40d   : > { %p1389_p11 = scmp.lt.s32.totalorder %s1387_s24, %s1383_s8 }
 0x40e   : > { %p1385_p0 = pnand %p1384_p10, %p1633_p12 }
 0x40f   : > { %p1390_p3 = por %p1389_p11, %p1388_p2 }
 0x410   : > { %p1386_p7 = pneg %p1385_p0 }
 0x412   : > { %p1391_p1 = pnand %p1390_p3, %p1386_p7 }
 0x414   : > { %1394 = shalt.err (!%p1391_p1)
}
 0x415   : > { %1165 = dma.vmem_to_hbm [thread:$0]  (%p1633_p12), %s875_s21, 128, %s872_s13, %s846_s20   ;;  %v1084_v10 = vld [vmem:[%s1861_s5 + $0x3] ss:$0 sm:$0xff] }
 0x416   : > { %s413_s12 = scalar_lea.vmem [#allocation10], %s1701_s11  ;;  %s1807_s17 = scalar_lea.hbm %s1862_s6, %s1090_s28 }
 0x417   : > { %s860_s14 = sshll.u32 %s413_s12, 4  ;;  %s841_s13 = scalar_lea.sflag [#allocation4], %s1698_s30  ;;  %s1809_s14 = int_to_ptr.vmem [resolvable:$true] %s860_s14 }
 0x418   : > { %s1395_s11 = scalar_lea.vmem %s1809_s14, 128  ;;  %s1499_s27 = smov [#allocation10]  }
 0x419   : > { %p1396_p4 = scmp.ne.s32.totalorder %s1809_s14, %s1395_s11  ;;  %s1399_s21 = sshll.u32 %s1499_s27, 4  ;;  %s1400_s21 = int_to_ptr.vmem [resolvable:$false] %s1399_s21 }
 0x41a   : > { %s1401_s28 = scalar_lea.vmem %s1400_s21, 256  ;;  %p1402_p6 = scmp.lt.s32.totalorder %s1809_s14, %s1400_s21 }
 0x41b   : > { %p1397_p5 = pnand %p1396_p4, %p1633_p12  ;;  %p1403_p9 = scmp.lt.s32.totalorder %s1401_s28, %s1395_s11 }
 0x41d   : > { %p1398_p8 = pneg %p1397_p5  ;;  %p1404_p10 = por %p1403_p9, %p1402_p6 }
 0x41f   : > { %p1405_p0 = pnand %p1404_p10, %p1398_p8 }
 0x4c6   : > { %v832_v11 = vpop.f32.mrf.mxu0 }
 0x4c7   : > { %v833_v12 = vadd.f32 %v1084_v10, %v832_v11 }
 0x4c8   : > { %v1152_v13 = vpop.f32.mrf.mxu0 }
 0x4c9   : > { %838 = vst.msk [vmem:[%s413_s12] sm:$0xff] %vm453_vm1, %v833_v12 }
 0x4ca   : > { %v835_v14 = vpop.f32.mrf.mxu0 }
 0x4cb   : > { %1408 = shalt.err (!%p1405_p0)
}
 0x4cc   : > { %s1409_s20 = scalar_lea.hbm %s1807_s17, 128  ;;  %s1413_s8 = scalar_lea.hbm %s1862_s6, 256 }
 0x4cd   : > { %p1410_p7 = scmp.ne.s32.totalorder %s1807_s17, %s1409_s20  ;;  %p1414_p3 = scmp.lt.s32.totalorder %s1807_s17, %s1862_s6 }
 0x4ce   : > { %p1415_p1 = scmp.lt.s32.totalorder %s1413_s8, %s1409_s20 }
 0x4cf   : > { %p1411_p2 = pnand %p1410_p7, %p1633_p12 }
 0x4d0   : > { %p1416_p4 = por %p1415_p1, %p1414_p3 }
 0x4d1   : > { %p1412_p11 = pneg %p1411_p2 }
 0x4d3   : > { %p1417_p5 = pnand %p1416_p4, %p1412_p11 }
 0x4d5   : > { %1420 = shalt.err (!%p1417_p5)
}
 0x4d6   : > { %1164 = dma.vmem_to_hbm [thread:$0]  (%p1633_p12), %s1809_s14, 128, %s1807_s17, %s841_s13   ;;  %v1153_v15 = vpop.f32.mrf.mxu0 }
 0x4d7 PF: > { %s1893_s24 = sld [smem:[#allocation18_spill]] }
 0x4d8   : > { %s1895_s9 = sld [smem:[#allocation20_spill]] }
 0x4dd   : > { %s886_s16 = sand.u32 1, %s1893_s24  }
 0x4de   : > { %p1896_p8 = scmp.ge.s32.totalorder %s1895_s9, 2  ;;  %s887_s22 = scalar_lea.sflag [#allocation4], %s886_s16 }
 0x4e0   : > { %p1183_p6 = pnand %p1896_p8, %p1637_p13 }
 0x4e2   : > { %p1184_p9 = pneg %p1183_p6 }
 0x4e4   : > { %1458 = dma.done.wait (%p1184_p9), %s887_s22, 128  }
 0x4e5   : > { %1460 = vsyncadd (%p1184_p9), %s887_s22, 4294967168  ;;  %s896_s12 = scalar_lea.sflag [#allocation12], %s886_s16 }
 0x4e6   : > { %1462 = dma.done.wait (%p1184_p9), %s896_s12, 128  }
 0x4e7   : > { %1464 = vsyncadd (%p1184_p9), %s896_s12, 4294967168  ;;  %s31_s29 = sadd.s32 1, %s1895_s9   ;;  %s1897_s18 = sld [smem:[#allocation22_spill]] }
 0x4e8   : > { %p28_p10 = scmp.ge.s32.totalorder %s31_s29, 4   ;;  %s1898_s27 = sld [smem:[#allocation19_spill]] }
 0x4e9   : > { %s1899_s28 = sld [smem:[#allocation21_spill]]  ;;  %s1900_s24 = smov %s1471_s25 }
 0x4ea   : > { %s1901_s25 = smov %s1475_s26  ;;  %30 = sbr.rel (!%p28_p10) target bundleno = 13 (0xd), region = 143 }
 0x4ed   : > { %s1902_s26 = smov %s1897_s18 }
 0x4ef   :  { %901 = vsyncpa [#allocation3], 1 }
 0x4f0   :  { %903 = vsyncpa [#allocation3 + $0x1], 1 }
 0x4f1   :  { %904 = vsyncpa [#allocation6], 1 }
 0x4f2   :  { %906 = vsyncpa [#allocation6 + $0x1], 1 }
 0x4f3   :  { %907 = vsyncpa [#allocation9], 1 }
 0x4f4   :  { %908 = vsyncpa [#allocation4], 1 }
 0x4f5   :  { %910 = vsyncpa [#allocation4 + $0x1], 1 }
 0x4f6   :  { %911 = vsyncpa [#allocation12], 1 }
 0x4f7   :  { %913 = vsyncpa [#allocation12 + $0x1], 1 }

</bundles_post_ra>
